<compile_context>
chip_gen: v5e
topology: v5e:2x2
jax: 0.10.0
libtpu: 0.0.40
codegen_flags: <defaults>
</compile_context>

<pallas_src>
import jax
import jax.numpy as jnp
from jax.experimental import pallas as pl
from jax.experimental.pallas import tpu as pltpu


def _round_down(v: int, m: int) -> int:
    return (v // m) * m


def _round_up(v: int, m: int) -> int:
    return ((v + m - 1) // m) * m


def _vmem_budget():
    """Generation-aware (target_block_bytes, vmem_limit_bytes)."""
    try:
        vmem = int(pltpu.get_tpu_info().vmem_capacity_bytes)
    except Exception:
        vmem = 128 * 1024 * 1024  # v5e/v6e physical VMEM; conservative default
    # Double-buffered in + out => ~4x block bytes resident; stay well clear of
    # the per-core ceiling (v5e/v6e: 128 MiB, v7x: 64 MiB/TC).
    target = max(1 << 20, min(8 << 20, vmem // 16))
    vmem_limit = min(64 << 20, vmem // 2)
    return target, vmem_limit


def _chomp_copy_kernel(x_ref, o_ref):
    # Copy the leading o_ref.shape[1] columns.  When the length axis is tiled
    # the input/output blocks are shape-identical and the slice is a no-op;
    # in the lane-first path it drops the chomped tail in VMEM.
    o_ref[...] = x_ref[:, : o_ref.shape[1]]


def chomp1d(x: jax.Array, chomp_size: int, *,
            target_block_bytes: int | None = None,
            force_pallas: bool = False) -> jax.Array:
    """Pallas equivalent of Chomp1d.forward: x[:, :, :-chomp_size] (NCL layout)."""
    # NOTE: PyTorch's x[:, :, :-0] would return an empty tensor; a TCN always
    # uses chomp_size = (k-1)*dilation > 0, so we require a positive chomp.
    assert chomp_size > 0, "chomp_size must be positive"
    n, c, l = x.shape
    l_out = l - chomp_size
    assert l_out > 0, "chomp_size must be smaller than the sequence length"

    # Fast path: sub-128-lane outputs force masked partial stores and tiny
    # strided DMAs; a plain XLA slice is strictly better there.
    if l_out < 128 and not force_pallas:
        return x[:, :, :l_out]

    rows = n * c
    x2d = x.reshape(rows, l)

    itemsize = jnp.dtype(x.dtype).itemsize
    sub_mult = max(8, 32 // itemsize)            # sublane packing: 8 f32 / 16 bf16 / 32 int8

    default_target, vmem_limit = _vmem_budget()
    target = int(target_block_bytes) if target_block_bytes else default_target

    # Input window when the length axis is NOT tiled: a 128-multiple window
    # covering the kept prefix (avoids re-reading the chomped tail), or the
    # full extent L if rounding up would overrun it.
    in_len_untiled = _round_up(l_out, 128)
    if in_len_untiled > l:
        in_len_untiled = l
    row_bytes = max(in_len_untiled, l_out) * itemsize

    if sub_mult * row_bytes <= target:
        # ---- Lane-first path: full-l_out blocks, budget spent on rows. ----
        lblk, in_lblk = l_out, in_len_untiled
        row_target = max(sub_mult, target // row_bytes)
        if rows <= row_target:
            rblk = rows                                   # full extent (always legal)
        else:
            rblk = max(sub_mult, _round_down(row_target, sub_mult))
        grid = (pl.cdiv(rows, rblk),)
        in_specs = [pl.BlockSpec((rblk, in_lblk), lambda i: (i, 0))]
        out_specs = pl.BlockSpec((rblk, lblk), lambda i: (i, 0))
    else:
        # ---- Length-tiled path: minimal row slab, 128-lane-multiple blocks. ----
        rblk = rows if rows < sub_mult else sub_mult
        lane_target = max(128, target // (rblk * itemsize))
        lblk = max(128, _round_down(min(l_out, lane_target), 128))
        in_lblk = lblk
        grid_rows = pl.cdiv(rows, rblk)
        grid_len = pl.cdiv(l_out, lblk)
        if grid_rows == 1:
            # Put the (only) big axis on the grid so v7x's 2 TCs split it.
            grid = (grid_len,)
            in_specs = [pl.BlockSpec((rblk, in_lblk), lambda j: (0, j))]
            out_specs = pl.BlockSpec((rblk, lblk), lambda j: (0, j))
        else:
            grid = (grid_rows, grid_len)
            in_specs = [pl.BlockSpec((rblk, in_lblk), lambda i, j: (i, j))]
            out_specs = pl.BlockSpec((rblk, lblk), lambda i, j: (i, j))

    out2d = pl.pallas_call(
        _chomp_copy_kernel,
        out_shape=jax.ShapeDtypeStruct((rows, l_out), x.dtype),
        grid=grid,
        in_specs=in_specs,
        out_specs=out_specs,
        compiler_params=pltpu.CompilerParams(
            dimension_semantics=("parallel",) * len(grid),
            vmem_limit_bytes=vmem_limit,
        ),
        cost_estimate=pl.CostEstimate(
            flops=0, transcendentals=0,
            bytes_accessed=rows * (l + l_out) * itemsize,
        ),
    )(x2d)

    return out2d.reshape(n, c, l_out)


if __name__ == "__main__":
    # Chomp1d has no parameters; chomp_size is a static hyperparameter
    # (in a TCN it equals the conv padding, (kernel_size - 1) * dilation).
    k0, k1, k2 = jax.random.split(jax.random.PRNGKey(0), 3)

    # 1) Tiny NCL input (batch=2, channels=4, length=16): default takes the
    #    XLA-slice fast path (l_out < 128); also force the Pallas path.
    chomp = 3
    x = jax.random.normal(k0, (2, 4, 16), dtype=jnp.float32)
    ref = x[:, :, :-chomp]
    out = jax.block_until_ready(chomp1d(x, chomp))
    assert out.shape == ref.shape == (2, 4, 16 - chomp)
    assert out.dtype == x.dtype
    assert bool(jnp.array_equal(out, ref))
    out_forced = jax.block_until_ready(chomp1d(x, chomp, force_pallas=True))
    assert bool(jnp.array_equal(out_forced, ref))

    # 2) Lane-first Pallas path: l_out >= 128 -> full-l_out contiguous blocks.
    x2 = jax.random.normal(k1, (2, 16, 300), dtype=jnp.float32)
    ref2 = x2[:, :, :-4]
    out2 = jax.block_until_ready(chomp1d(x2, 4))
    assert out2.shape == ref2.shape == (2, 16, 296)
    assert bool(jnp.array_equal(out2, ref2))

    # 3) Force the length-tiled path with a tiny block budget (exercises the
    #    padded tail block and the 2-D grid), plus the grid_rows==1 case where
    #    the length axis becomes the 1-D grid.
    out3 = jax.block_until_ready(chomp1d(x2, 4, target_block_bytes=4096))
    assert bool(jnp.array_equal(out3, ref2))
    x3 = jax.random.normal(k2, (1, 8, 300), dtype=jnp.float32)
    ref3 = x3[:, :, :-4]
    out4 = jax.block_until_ready(chomp1d(x3, 4, target_block_bytes=4096))
    assert bool(jnp.array_equal(out4, ref3))

    print("KERNEL_OK")
</pallas_src>

<mosaic_0001>
module attributes {stable_mosaic.version = 11 : i64} {
  func.func @_chomp_copy_kernel(%arg0: i32, %arg1: memref<8x16xf32, #tpu.memory_space<vmem>>, %arg2: memref<8x13xf32, #tpu.memory_space<vmem>>) attributes {dimension_semantics = [#tpu.dimension_semantics<parallel>], iteration_bounds = array<i64: 1>, scalar_prefetch = 0 : i64, scratch_operands = 0 : i64, tpu.core_type = #tpu.core_type<tc>, window_params = [{transform_indices = @transform_0, window_bounds = array<i64: 8, 16>}, {transform_indices = @transform_1, window_bounds = array<i64: 8, 13>}]} {
    %c0 = arith.constant 0 : index
    %c0_0 = arith.constant 0 : index
    %0 = vector.load %arg1[%c0, %c0_0] : memref<8x16xf32, #tpu.memory_space<vmem>>, vector<8x13xf32>
    %c0_1 = arith.constant 0 : index
    %c0_2 = arith.constant 0 : index
    %1 = vector.load %arg2[%c0_1, %c0_2] : memref<8x13xf32, #tpu.memory_space<vmem>>, vector<8x13xf32>
    tpu.vector_store %arg2[%c0_1, %c0_2], %0 {strides = array<i32>} : memref<8x13xf32, #tpu.memory_space<vmem>>, vector<8x13xf32>,
    return
  }
  func.func @transform_0(%arg0: i32) -> (i32, i32) {
    %c0_i32 = arith.constant 0 : i32
    %c0_i32_0 = arith.constant 0 : i32
    return %arg0, %c0_i32 : i32, i32
  }
  func.func @transform_1(%arg0: i32) -> (i32, i32) {
    %c0_i32 = arith.constant 0 : i32
    %c0_i32_0 = arith.constant 0 : i32
    return %arg0, %c0_i32 : i32, i32
  }
}

</mosaic_0001>

<bundles_post_ra>
// kernel: tpu_custom_call.1
= control target key start
LH: loop header
LB: loop body
LE: loop exit
PB: predicated region body
PF: predicated region fallthrough
CT: control target
= control target key end

     0   :  { %6 = vsyncpa [#allocation3], 0  ;;  %s115_s0 = inlined_call_operand.hbm [shape: f32[8,16], index: 0, kind: input, shape index: {}]   ;;  %s116_s1 = inlined_call_operand.hbm [shape: f32[8,13], index: 1, kind: output, shape index: {}]  }
   0x1   :  { %7 = vsyncpa [#allocation4], 0  ;;  %s13_s8 = sshll.u32 %s115_s0, 4  ;;  %s97_s9 = smov [#allocation2]   ;;  %s14_s8 = int_to_ptr.hbm [resolvable:$true] %s13_s8 }
   0x2   :  { %s15_s10 = sshll.u32 %s97_s9, 4  ;;  %s16_s10 = int_to_ptr.vmem [resolvable:$true] %s15_s10 }
   0x3   :  { %18 = dma.hbm_to_vmem [thread:$0]  %s14_s8, 128, %s16_s10, [#allocation3]  }
   0x4   :  { %93 = dma.done.wait [#allocation3], 128  }
   0x5   :  { %94 = vsyncadd [#allocation3], 4294967168  ;;  %s98_s11 = smov [#allocation5]   ;;  %s33_s15 = sshll.u32 %s116_s1, 4  ;;  %vm24_vm0 = vcmask 105472   ;;  %v23_v0 = vld [vmem:[#allocation2] sm:$0xff]  ;;  %s34_s15 = int_to_ptr.hbm [resolvable:$true] %s33_s15 }
   0x6   :  { %s31_s12 = sshll.u32 %s98_s11, 4  ;;  %25 = vst.msk [vmem:[#allocation5] sm:$0xff] %vm24_vm0, %v23_v0  ;;  %s32_s12 = int_to_ptr.vmem [resolvable:$true] %s31_s12 }
   0x7   :  { %36 = dma.vmem_to_hbm [thread:$0]  %s32_s12, 128, %s34_s15, [#allocation4]  }
   0x8   :  { %95 = dma.done.wait [#allocation4], 128  }
   0x9   :  { %96 = vsyncadd [#allocation4], 4294967168 }
   0xa   :  { %41 = vsyncpa [#allocation3], 1 }
   0xb   :  { %42 = vsyncpa [#allocation4], 1 }

</bundles_post_ra>
